<compile_context>
chip_gen: v6e
topology: v6e:2x2x1
jax: 0.10.0
libtpu: 0.0.40
codegen_flags: <defaults>
</compile_context>

<pallas_src>
import jax
import jax.numpy as jnp
from jax import lax
from jax.experimental import pallas as pl
from jax.experimental.pallas import tpu as pltpu


def _make_kernel(tile_n, rem):
    """Build the WSReadout kernel body (tile_n, rem = N % tile_n are static)."""

    def kernel(seq_ref, q_ref, o_ref, m_ref, l_ref, acc_ref):
        # seq_ref: (1, tile_n, D)  current node tile of the current batch
        # q_ref  : (1, 1, D)       query vector of the current batch
        # o_ref  : (1, 1, D)       output block (resident across the node-tile axis)
        # m_ref  : (1, 1)  f32     running max of scores (online softmax)
        # l_ref  : (1, 1)  f32     running softmax denominator
        # acc_ref: (1, D)  f32     running weighted sum
        t = pl.program_id(1)
        last = pl.num_programs(1) - 1

        @pl.when(t == 0)
        def _init():
            m_ref[...] = jnp.full_like(m_ref, -jnp.inf)
            l_ref[...] = jnp.zeros_like(l_ref)
            acc_ref[...] = jnp.zeros_like(acc_ref)

        seq = seq_ref[0]          # (tile_n, D), native dtype
        q = q_ref[0]              # (1, D),      native dtype

        # Scores on the MXU, landing lane-major: (1, D) . (tile_n, D)^T -> (1, tile_n).
        s = lax.dot_general(q, seq, (((1,), (1,)), ((), ())),
                            preferred_element_type=jnp.float32)

        if rem:  # trace-time: last node tile has (tile_n - rem) padded rows
            n_valid = jnp.where(t == last, rem, tile_n)
            lane = lax.broadcasted_iota(jnp.int32, (1, tile_n), 1)
            valid = lane < n_valid
            s = jnp.where(valid, s, jnp.float32(-1e30))

        m_prev = m_ref[...]                                             # (1, 1)
        m_new = jnp.maximum(m_prev, jnp.max(s, axis=1, keepdims=True))  # (1, 1)
        alpha = jnp.exp(m_prev - m_new)                                 # (1, 1)
        p = jnp.exp(s - m_new)                                          # (1, tile_n), lane-dense
        if rem:
            p = jnp.where(valid, p, jnp.float32(0.0))

        l_ref[...] = alpha * l_ref[...] + jnp.sum(p, axis=1, keepdims=True)

        seq_acc = seq
        if rem:
            # Zero padded rows so 0-weight x stale-VMEM garbage (possibly NaN)
            # cannot pollute the accumulator.
            row = lax.broadcasted_iota(jnp.int32, (tile_n, 1), 0)
            seq_acc = jnp.where(row < n_valid, seq, jnp.zeros_like(seq))

        # Weighted sum on the MXU: (1, tile_n) . (tile_n, D) -> (1, D).
        acc_ref[...] = alpha * acc_ref[...] + jnp.dot(
            p.astype(seq.dtype), seq_acc, preferred_element_type=jnp.float32)

        m_ref[...] = m_new

        @pl.when(t == last)
        def _finalize():
            out = acc_ref[...] / l_ref[...]                 # (1, D)
            o_ref[...] = out.astype(o_ref.dtype)[None]

    return kernel


def ws_readout_forward(seq, query, *, tile_n=None):
    """Pallas equivalent of WSReadout.forward(seq, query).

    seq   : (B, N, D) float32/bfloat16, D must be 64 (module hardcodes repeat(1,1,64))
    query : (B, 1, D)
    returns (B, D) in seq.dtype
    """
    B, N, D = seq.shape
    assert D == 64, "WSReadout hardcodes a feature dim of 64 (sim.repeat(1,1,64))."
    assert query.shape == (B, 1, D), query.shape
    query = query.astype(seq.dtype)

    itemsize = jnp.dtype(seq.dtype).itemsize
    # ~2 MiB blocks (f32) / ~2 MiB (bf16): big enough that the ~0.35us per-grid-step
    # overhead is negligible vs. the DMA, small enough to double-buffer everywhere.
    max_tile = 8192 if itemsize >= 4 else 16384
    if tile_n is None:
        tile_n = N if N <= max_tile else max_tile
    else:
        tile_n = min(tile_n, N)
    if tile_n < N:
        tile_n = max(8, (tile_n // 8) * 8)        # keep (8,128) sublane divisibility

    n_tiles = pl.cdiv(N, tile_n)
    rem = N % tile_n                              # 0 -> no tail masking code generated

    cost = pl.CostEstimate(
        flops=int(4 * B * N * D),                 # score dot + weighted sum (MXU)
        transcendentals=int(B * N),               # exp
        bytes_accessed=int(seq.size * itemsize + query.size * itemsize
                           + B * D * itemsize),
    )

    out = pl.pallas_call(
        _make_kernel(tile_n, rem),
        out_shape=jax.ShapeDtypeStruct((B, 1, D), seq.dtype),
        grid_spec=pltpu.PrefetchScalarGridSpec(
            num_scalar_prefetch=0,
            grid=(B, n_tiles),
            in_specs=[
                pl.BlockSpec((1, tile_n, D), lambda b, t: (b, t, 0)),
                pl.BlockSpec((1, 1, D), lambda b, t: (b, 0, 0)),
            ],
            out_specs=pl.BlockSpec((1, 1, D), lambda b, t: (b, 0, 0)),
            scratch_shapes=[
                pltpu.VMEM((1, 1), jnp.float32),   # running max
                pltpu.VMEM((1, 1), jnp.float32),   # running denom
                pltpu.VMEM((1, D), jnp.float32),   # running weighted sum
            ],
        ),
        compiler_params=pltpu.CompilerParams(
            dimension_semantics=("parallel", "arbitrary"),
            vmem_limit_bytes=32 * 1024 * 1024,
        ),
        cost_estimate=cost,
    )(seq, query)

    return out.reshape(B, D)


def _reference_forward(seq, query):
    # Pure-JAX mirror of the PyTorch module (sanity check).
    q = jnp.transpose(query, (0, 2, 1))          # (B, D, 1)
    sim = jnp.matmul(seq, q)                     # (B, N, 1)
    sim = jax.nn.softmax(sim, axis=1)
    sim = jnp.tile(sim, (1, 1, 64))              # repeat(1, 1, 64)
    return jnp.sum(seq * sim, axis=1)            # (B, 64)


if __name__ == "__main__":
    B, D = 2, 64
    key = jax.random.PRNGKey(0)
    k1, k2, k3, k4 = jax.random.split(key, 4)

    def mk(k, shape):
        # bf16-exact f32 values so kernel-vs-reference differences are purely
        # algorithmic, independent of the MXU's default matmul precision.
        x = jax.random.normal(k, shape, jnp.float32)
        return x.astype(jnp.bfloat16).astype(jnp.float32)

    # Case 1: N divisible by tile_n -> multi-tile online-softmax accumulation.
    N1 = 96
    seq1, q1 = mk(k1, (B, N1, D)), mk(k2, (B, 1, D))
    out1 = jax.block_until_ready(ws_readout_forward(seq1, q1, tile_n=32))
    ref1 = _reference_forward(seq1, q1)
    assert out1.shape == (B, D), out1.shape
    assert jnp.allclose(out1, ref1, atol=1e-2, rtol=1e-2), \
        float(jnp.max(jnp.abs(out1 - ref1)))

    # Case 2: ragged N -> masked tail tile (the production large-graph path).
    N2 = 90
    seq2, q2 = mk(k3, (B, N2, D)), mk(k4, (B, 1, D))
    out2 = jax.block_until_ready(ws_readout_forward(seq2, q2, tile_n=32))
    ref2 = _reference_forward(seq2, q2)
    assert jnp.allclose(out2, ref2, atol=1e-2, rtol=1e-2), \
        float(jnp.max(jnp.abs(out2 - ref2)))

    # Case 3: bf16 inputs (halves HBM traffic); compile/run smoke check.
    out3 = jax.block_until_ready(
        ws_readout_forward(seq1.astype(jnp.bfloat16), q1.astype(jnp.bfloat16)))
    assert out3.shape == (B, D)
    assert bool(jnp.all(jnp.isfinite(out3.astype(jnp.float32))))

    print("KERNEL_OK")
</pallas_src>

<mosaic_0001>
module attributes {stable_mosaic.version = 11 : i64} {
  func.func @kernel(%arg0: i32, %arg1: i32, %arg2: memref<1x32x64xf32, #tpu.memory_space<vmem>>, %arg3: memref<1x1x64xf32, #tpu.memory_space<vmem>>, %arg4: memref<1x1x64xf32, #tpu.memory_space<vmem>>, %arg5: memref<1x1xf32, #tpu.memory_space<vmem>>, %arg6: memref<1x1xf32, #tpu.memory_space<vmem>>, %arg7: memref<1x64xf32, #tpu.memory_space<vmem>>) attributes {dimension_semantics = [#tpu.dimension_semantics<parallel>, #tpu.dimension_semantics<arbitrary>], iteration_bounds = array<i64: 2, 3>, scalar_prefetch = 0 : i64, scratch_operands = 3 : i64, tpu.core_type = #tpu.core_type<tc>, window_params = [{transform_indices = @transform_0, window_bounds = array<i64: 1, 32, 64>}, {transform_indices = @transform_1, window_bounds = array<i64: 1, 1, 64>}, {transform_indices = @transform_2, window_bounds = array<i64: 1, 1, 64>}]} {
    %c0_i32 = arith.constant 0 : i32
    %0 = arith.cmpi eq, %arg1, %c0_i32 : i32
    %1 = arith.extui %0 : i1 to i32
    %c0_i32_0 = arith.constant 0 : i32
    %2 = arith.cmpi ne, %1, %c0_i32_0 : i32
    scf.if %2 {
      %cst_22 = arith.constant 0xFF800000 : f32
      %33 = vector.broadcast %cst_22 : f32 to vector<1x1xf32>
      %c0_23 = arith.constant 0 : index
      %c0_24 = arith.constant 0 : index
      %34 = vector.load %arg5[%c0_23, %c0_24] : memref<1x1xf32, #tpu.memory_space<vmem>>, vector<1x1xf32>
      tpu.vector_store %arg5[%c0_23, %c0_24], %33 {strides = array<i32>} : memref<1x1xf32, #tpu.memory_space<vmem>>, vector<1x1xf32>,
      %cst_25 = arith.constant 0.000000e+00 : f32
      %35 = vector.broadcast %cst_25 : f32 to vector<1x1xf32>
      %c0_26 = arith.constant 0 : index
      %c0_27 = arith.constant 0 : index
      %36 = vector.load %arg6[%c0_26, %c0_27] : memref<1x1xf32, #tpu.memory_space<vmem>>, vector<1x1xf32>
      tpu.vector_store %arg6[%c0_26, %c0_27], %35 {strides = array<i32>} : memref<1x1xf32, #tpu.memory_space<vmem>>, vector<1x1xf32>,
      %cst_28 = arith.constant 0.000000e+00 : f32
      %37 = vector.broadcast %cst_28 : f32 to vector<1x64xf32>
      %c0_29 = arith.constant 0 : index
      %c0_30 = arith.constant 0 : index
      %38 = vector.load %arg7[%c0_29, %c0_30] : memref<1x64xf32, #tpu.memory_space<vmem>>, vector<1x64xf32>
      tpu.vector_store %arg7[%c0_29, %c0_30], %37 {strides = array<i32>} : memref<1x64xf32, #tpu.memory_space<vmem>>, vector<1x64xf32>,
    } else {
    }
    %c0 = arith.constant 0 : index
    %c0_1 = arith.constant 0 : index
    %c0_2 = arith.constant 0 : index
    %3 = vector.load %arg2[%c0, %c0_1, %c0_2] : memref<1x32x64xf32, #tpu.memory_space<vmem>>, vector<1x32x64xf32>
    %4 = vector.shape_cast %3 : vector<1x32x64xf32> to vector<32x64xf32>
    %c0_3 = arith.constant 0 : index
    %c0_4 = arith.constant 0 : index
    %c0_5 = arith.constant 0 : index
    %5 = vector.load %arg3[%c0_3, %c0_4, %c0_5] : memref<1x1x64xf32, #tpu.memory_space<vmem>>, vector<1x1x64xf32>
    %6 = vector.shape_cast %5 : vector<1x1x64xf32> to vector<1x64xf32>
    %cst = arith.constant dense<0.000000e+00> : vector<1x32xf32>
    %7 = tpu.matmul %6, %4, %cst {dimension_numbers = #tpu.dot_dimension_numbers<[1], [1], [0], [0], [0, 0, 1, 0], [], []>} : vector<1x64xf32>, vector<32x64xf32>, vector<1x32xf32> -> vector<1x32xf32>
    %c0_6 = arith.constant 0 : index
    %c0_7 = arith.constant 0 : index
    %8 = vector.load %arg5[%c0_6, %c0_7] : memref<1x1xf32, #tpu.memory_space<vmem>>, vector<1x1xf32>
    %cst_8 = arith.constant dense<0xFF800000> : vector<1xf32>
    %9 = vector.multi_reduction <maximumf>, %7, %cst_8 [1] : vector<1x32xf32> to vector<1xf32>
    %10 = vector.shape_cast %9 : vector<1xf32> to vector<1x1xf32>
    %11 = arith.maximumf %8, %10 : vector<1x1xf32>
    %12 = arith.subf %8, %11 : vector<1x1xf32>
    %13 = math.exp %12 : vector<1x1xf32>
    %14 = vector.broadcast %11 : vector<1x1xf32> to vector<1x32xf32>
    %15 = arith.subf %7, %14 : vector<1x32xf32>
    %16 = math.exp %15 : vector<1x32xf32>
    %c0_9 = arith.constant 0 : index
    %c0_10 = arith.constant 0 : index
    %17 = vector.load %arg6[%c0_9, %c0_10] : memref<1x1xf32, #tpu.memory_space<vmem>>, vector<1x1xf32>
    %18 = arith.mulf %13, %17 : vector<1x1xf32>
    %cst_11 = arith.constant dense<0.000000e+00> : vector<1xf32>
    %19 = vector.multi_reduction <add>, %16, %cst_11 [1] : vector<1x32xf32> to vector<1xf32>
    %20 = vector.shape_cast %19 : vector<1xf32> to vector<1x1xf32>
    %21 = arith.addf %18, %20 : vector<1x1xf32>
    %c0_12 = arith.constant 0 : index
    %c0_13 = arith.constant 0 : index
    %22 = vector.load %arg6[%c0_12, %c0_13] : memref<1x1xf32, #tpu.memory_space<vmem>>, vector<1x1xf32>
    tpu.vector_store %arg6[%c0_12, %c0_13], %21 {strides = array<i32>} : memref<1x1xf32, #tpu.memory_space<vmem>>, vector<1x1xf32>,
    %c0_14 = arith.constant 0 : index
    %c0_15 = arith.constant 0 : index
    %23 = vector.load %arg7[%c0_14, %c0_15] : memref<1x64xf32, #tpu.memory_space<vmem>>, vector<1x64xf32>
    %24 = vector.broadcast %13 : vector<1x1xf32> to vector<1x64xf32>
    %25 = arith.mulf %24, %23 : vector<1x64xf32>
    %cst_16 = arith.constant dense<0.000000e+00> : vector<1x64xf32>
    %26 = tpu.matmul %16, %4, %cst_16 {dimension_numbers = #tpu.dot_dimension_numbers<[1], [0], [0], [1], [0, 0, 1, 1], [], []>} : vector<1x32xf32>, vector<32x64xf32>, vector<1x64xf32> -> vector<1x64xf32>
    %27 = arith.addf %25, %26 : vector<1x64xf32>
    %c0_17 = arith.constant 0 : index
    %c0_18 = arith.constant 0 : index
    %28 = vector.load %arg7[%c0_17, %c0_18] : memref<1x64xf32, #tpu.memory_space<vmem>>, vector<1x64xf32>
    tpu.vector_store %arg7[%c0_17, %c0_18], %27 {strides = array<i32>} : memref<1x64xf32, #tpu.memory_space<vmem>>, vector<1x64xf32>,
    %c0_19 = arith.constant 0 : index
    %c0_20 = arith.constant 0 : index
    %29 = vector.load %arg5[%c0_19, %c0_20] : memref<1x1xf32, #tpu.memory_space<vmem>>, vector<1x1xf32>
    tpu.vector_store %arg5[%c0_19, %c0_20], %11 {strides = array<i32>} : memref<1x1xf32, #tpu.memory_space<vmem>>, vector<1x1xf32>,
    %c2_i32 = arith.constant 2 : i32
    %30 = arith.cmpi eq, %arg1, %c2_i32 : i32
    %31 = arith.extui %30 : i1 to i32
    %c0_i32_21 = arith.constant 0 : i32
    %32 = arith.cmpi ne, %31, %c0_i32_21 : i32
    scf.if %32 {
      %c0_22 = arith.constant 0 : index
      %c0_23 = arith.constant 0 : index
      %33 = vector.load %arg7[%c0_22, %c0_23] : memref<1x64xf32, #tpu.memory_space<vmem>>, vector<1x64xf32>
      %c0_24 = arith.constant 0 : index
      %c0_25 = arith.constant 0 : index
      %34 = vector.load %arg6[%c0_24, %c0_25] : memref<1x1xf32, #tpu.memory_space<vmem>>, vector<1x1xf32>
      %35 = vector.broadcast %34 : vector<1x1xf32> to vector<1x64xf32>
      %36 = arith.divf %33, %35 : vector<1x64xf32>
      %37 = vector.shape_cast %36 : vector<1x64xf32> to vector<1x1x64xf32>
      %c0_26 = arith.constant 0 : index
      %c0_27 = arith.constant 0 : index
      %c0_28 = arith.constant 0 : index
      %38 = vector.load %arg4[%c0_26, %c0_27, %c0_28] : memref<1x1x64xf32, #tpu.memory_space<vmem>>, vector<1x1x64xf32>
      tpu.vector_store %arg4[%c0_26, %c0_27, %c0_28], %37 {strides = array<i32>} : memref<1x1x64xf32, #tpu.memory_space<vmem>>, vector<1x1x64xf32>,
    } else {
    }
    return
  }
  func.func @transform_0(%arg0: i32, %arg1: i32) -> (i32, i32, i32) {
    %c0_i32 = arith.constant 0 : i32
    %c0_i32_0 = arith.constant 0 : i32
    return %arg0, %arg1, %c0_i32 : i32, i32, i32
  }
  func.func @transform_1(%arg0: i32, %arg1: i32) -> (i32, i32, i32) {
    %c0_i32 = arith.constant 0 : i32
    %c0_i32_0 = arith.constant 0 : i32
    %c0_i32_1 = arith.constant 0 : i32
    return %arg0, %c0_i32, %c0_i32_0 : i32, i32, i32
  }
  func.func @transform_2(%arg0: i32, %arg1: i32) -> (i32, i32, i32) {
    %c0_i32 = arith.constant 0 : i32
    %c0_i32_0 = arith.constant 0 : i32
    %c0_i32_1 = arith.constant 0 : i32
    return %arg0, %c0_i32, %c0_i32_0 : i32, i32, i32
  }
}

</mosaic_0001>

<bundles_post_ra>
// kernel: tpu_custom_call.1
= control target key start
LH: loop header
LB: loop body
LE: loop exit
PB: predicated region body
PF: predicated region fallthrough
CT: control target
= control target key end

     0   :  { %7 = vsyncpa [#allocation6], 0  ;;  %s925_s0 = inlined_call_operand.vmem [shape: f32[2,96,64], index: 0, kind: input, shape index: {}]   ;;  %s926_s1 = inlined_call_operand.vmem [shape: f32[2,1,64], index: 1, kind: input, shape index: {}]   ;;  %s927_s2 = inlined_call_operand.hbm [shape: f32[2,1,64], index: 2, kind: output, shape index: {}]  }
   0x1   :  { %9 = vsyncpa [#allocation6 + $0x1], 0  ;;  %s766_s9 = smov 0   ;;  %s768_s10 = smov 0  }
   0x2   :  { %s770_s11 = smov 0   ;;  %s772_s12 = smov 0  }
   0x3   :  { %s774_s13 = smov 0   ;;  %s776_s14 = smov 0  }
   0x4   :  { %s778_s15 = smov 0   ;;  %s780_s16 = smov 0  }
   0x5 LB: > { %s513_s17 = sadd.s32 4294967295, %s742_s16   ;;  %s514_s18 = sadd.s32 4294967294, %s742_s16   ;;  %s742_s16 = sphi %s780_s16, %s15_s16   ;;  %s738_s15 = sphi %s778_s15, %s936_s15   ;;  %s734_s14 = sphi %s776_s14, %s935_s14   ;;  %s730_s13 = sphi %s774_s13, %s934_s13   ;;  %s726_s12 = sphi %s772_s12, %s933_s12   ;;  %s722_s11 = sphi %s770_s11, %s932_s11   ;;  %s718_s10 = sphi %s768_s10, %s931_s10   ;;  %s714_s9 = sphi %s766_s9, %s930_s9  }
   0x6   : > { %s24_s19 = sadd.s32 1, %s734_s14  ;;  %s27_s20 = sadd.s32 1, %s738_s15 }
   0x7   : > { %p25_p0 = scmp.ge.s32.totalorder %s24_s19, 3  ;;  %p98_p1 = scmp.ne.s32.totalorder %s722_s11, %s718_s10 }
   0x8   : > { %p99_p2 = scmp.eq.s32.totalorder %s513_s17, 5  ;;  %p104_p4 = scmp.ne.s32.totalorder %s718_s10, %s714_s9 }
   0x9   : > { %s938_s19 = smov (%p25_p0, %s24_s19), 0  ;;  %s940_s20 = smov (!%p25_p0, %s27_s20), %s738_s15 }
   0xa   : > { %p815_p3 = por %p99_p2, %p98_p1  ;;  %p29_p5 = scmp.ge.s32.totalorder %s940_s20, 2 }
   0xb   : > { %p105_p6 = scmp.eq.s32.totalorder %s514_s18, 5  ;;  %p517_p7 = scmp.ge.s32.totalorder %s742_s16, 1 }
   0xc   : > { %p142_p8 = scmp.lt.s32.totalorder %s742_s16, 7  ;;  %s942_s20 = smov (%p29_p5, %s940_s20), 0 }
   0xd   : > { %p825_p9 = por %p105_p6, %p104_p4  ;;  %s85_s23 = ssub.s32 %s738_s15, %s942_s20 }
   0xe   : > { %p143_p10 = pnand %p517_p7, %p142_p8  ;;  %s88_s24 = sadd.s32 1, %s722_s11 }
   0xf   : > { %p86_p11 = scmp.eq.s32.totalorder %s85_s23, 0  ;;  %s168_s26 = sand.u32 (!%p143_p10), 1, %s718_s10  }
  0x10   : > { %146 = sbr.rel (%p143_p10) target bundleno = 891 (0x37b), region = 28  ;;  %s518_s27 = sshll.u32 (!%p143_p10), %s726_s12, 2 }
  0x11   : > { %s833_s25 = scalar_select %p86_p11, %s722_s11, %s88_s24  }
  0x12   : > { %p171_p12 = scmp.lt.s32.totalorder (!%p143_p10), %s730_s13, 1  ;;  %p173_p13 = scmp.lt.s32.totalorder (!%p143_p10), %s518_s27, 11 }
  0x13   : > { %s853_s18 = scalar_lea.vmem (!%p143_p10), [#allocation5], %s168_s26  ;;  %p520_p0 = scmp.ne.s32.totalorder (!%p143_p10), %s726_s12, 0 }
  0x15   : > { %s839_s28 = scalar_select %p171_p12, %s730_s13, 1 }
  0x16   : > { %s944_s27 = smov (!%p173_p13, %s518_s27), 11 }
  0x17   : > { %s563_s29 = smul.u32 12, %s839_s28  ;;  %s182_s4 = scalar_lea.vmem %s926_s1, %s839_s28 }
  0x18   : > { %186 = sbr.rel (%p520_p0) target bundleno = 32 (0x20), region = 32 }
  0x19   : > { %s176_s5 = sadd.s32 %s563_s29, %s944_s27 }
  0x1a   : > { %s519_s6 = sshll.u32 %s176_s5, 3 }
  0x1b   : > { %s849_s17 = scalar_lea.vmem %s925_s0, %s519_s6 }
  0x1d   : > { %vm187_vm0 = vcmask 0   ;;  %vm190_vm1 = vcmask 516096   ;;  %v744_v0 = vmov -inf   ;;  %v745_v1 = vmov 0.0  }
  0x1e   : > { %188 = vst.msk [vmem:[#allocation2] sm:$0x1] %vm187_vm0, %v744_v0  ;;  %189 = vst.msk [vmem:[#allocation3] sm:$0x1] %vm187_vm0, %v745_v1 }
  0x1f   : > { %191 = vst.msk [vmem:[#allocation4] sm:$0x1] %vm190_vm1, %v745_v1 }
  0x20 PF: > { %v195_v2 = vld [vmem:[%s849_s17 + $0x18] sm:$0xff]  ;;  %vm197_vm2 = vcmask 523264   ;;  %v746_v3 = vmov 0.0   ;;  %vm747_vm3 = vmmov 0   ;;  %v194_v4 = vld [vmem:[%s849_s17 + $0x10] sm:$0xff]  ;;  %v193_v5 = vld [vmem:[%s849_s17 + $0x8] sm:$0xff]  ;;  %v297_v16 = vlaneseq }
  0x21   : > { %541 = vmatprep.subr.mxu0 %v746_v3  ;;  %549 = vmatprep.mubr.msk.f32.mxu0 %vm747_vm3, %v746_v3  ;;  %v192_v6 = vld [vmem:[%s849_s17] sm:$0xff]  ;;  %vm284_vm4 = vcmask 253952   ;;  %v748_v11 = vmov 0   ;;  %vm310_vm5 = vcmask 0   ;;  %vm323_vm6 = vcmask 261120   ;;  %p527_p1 = scmp.ne.s32.totalorder %s726_s12, 2 }
  0x22   : > { %542 = vmatpush3.xpose.msk.msra.mxu0 %vm197_vm2, %v195_v2  ;;  %552 = vmatprep.subr.mxu1 %v746_v3  ;;  %v196_v7 = vld [vmem:[%s182_s4] sm:$0x1]  ;;  %v298_v17 = vshrl.u32 %v297_v16, 7  ;;  %vm398_vm7 = vcmask 516096  }
  0x23   : > { %543 = vmatprep.subr.mxu0 %v746_v3  ;;  %553 = vmatpush3.msra.mxu1 %v195_v2 }
  0x24   : > { %554 = vmatprep.subr.mxu1 %v746_v3  ;;  %560 = vmatprep.mubr.msk.f32.mxu1 %vm747_vm3, %v746_v3  ;;  %v299_v18 = vsub.s32 0, %v298_v17 }
  0x25   : > { %555 = vmatpush3.msra.mxu1 %v194_v4  ;;  %641 = vset.pattern.permute.xlu0 %v748_v11  ;;  %v283_v12 = vld [vmem:[#allocation2] sm:$0x1]  ;;  %v304_v27 = vld [vmem:[#allocation3] sm:$0x1] }
  0x26   : > { %544 = vmatpush3.xpose.msk.msra.mxu0 %vm197_vm2, %v194_v4  ;;  %556 = vmatprep.subr.mxu1 %v746_v3  ;;  %v312_v33 = vld [vmem:[#allocation4] sm:$0x1] }
  0x27   : > { %545 = vmatprep.subr.mxu0 %v746_v3  ;;  %557 = vmatpush3.msra.mxu1 %v193_v5 }
  0x28   : > { %558 = vmatprep.subr.mxu1 %v746_v3  ;;  %642 = vset.pattern.permute.xlu1 %v748_v11 }
  0x29   : > { %559 = vmatpush3.msra.mxu1 %v192_v6 }
  0x2a   : > { %546 = vmatpush3.xpose.msk.msra.mxu0 %vm197_vm2, %v193_v5 }
  0x2b   : > { %547 = vmatprep.subr.mxu0 %v746_v3 }
  0x2e   : > { %548 = vmatpush3.xpose.msk.msra.mxu0 %vm197_vm2, %v192_v6 }
  0x31   : > { %550 = vmatmul.mubr.msk.f32.vlgmr.msra.gmra.mxu0 %vm197_vm2, %v196_v7 }
  0xf1   : > { %v279_v8 = vpop.f32.mrf.mxu0 }
  0xf2   : > { %v285_v9 = vsel %vm284_vm4, %v279_v8, -inf }
  0xf3   : > { %286 = vmax.xlane.f32.xlu0 %v285_v9  ;;  %v551_v10 = vpop.f32.mrf.mxu0 }
 0x17c   : > { %v287_v13 = vpop.xlane.xlu0 %286 }
 0x17d   : > { %v288_v14 = vmax.f32 %v283_v12, %v287_v13 }
 0x17f   : > { %v289_v15 = vsub.f32 %v283_v12, %v288_v14  ;;  %400 = vst.msk [vmem:[#allocation2] sm:$0x1] %vm310_vm5, %v288_v14  ;;  %294 = vperm.xlu0 %641, %v288_v14  }
 0x181   : > { %v290_v24 = vmul.f32 1.442695, %v289_v15 }
 0x1fa   : > { %v295_v19 = vpop.permute.xlu0 %294 }
 0x1fb   : > { %v300_v20 = vrot.slane %v295_v19, %v299_v18 }
 0x1fd   : > { %v301_v21 = vsub.f32 %v279_v8, %v300_v20 }
 0x1ff   : > { %v302_v22 = vmul.f32 1.442695, %v301_v21 }
 0x201   : > { %643 = vpow2.f32 %v302_v22 }
 0x202   : > { %645 = vpow2.f32 %v290_v24 }
 0x20e   : > { %v644_v23 = vpop.eup %643 }
 0x20f   : > { %561 = vmatmul.mubr.msk.f32.vlgmr.msra.gmra.mxu1 %vm323_vm6, %v644_v23  ;;  %v306_v25 = vsel %vm284_vm4, %v644_v23, 0.0  ;;  %v646_v26 = vpop.eup %645 }
 0x210   : > { %307 = vadd.xlane.f32.xlu1 %v306_v25  ;;  %v305_v28 = vmul.f32 %v646_v26, %v304_v27 }
 0x221   : > { %315 = vperm.xlu1 %642, %v646_v26  }
 0x299   : > { %v308_v29 = vpop.xlane.xlu1 %307 }
 0x29a   : > { %v309_v30 = vadd.f32 %v308_v29, %v305_v28 }
 0x29c   : > { %311 = vst.msk [vmem:[#allocation3] sm:$0x1] %vm310_vm5, %v309_v30 }
 0x29d   : > { %v316_v31 = vpop.permute.xlu1 %315 }
 0x29e   : > { %v321_v32 = vrot.slane %v316_v31, %v299_v18 }
 0x2a0   : > { %v322_v34 = vmul.f32 %v321_v32, %v312_v33 }
 0x2ce   : > { %404 = sbr.rel (%p527_p1) target bundleno = 868 (0x364), region = 36 }
 0x2cf   : > { %v393_v35 = vpop.f32.mrf.mxu1 }
 0x2d0   : > { %v397_v36 = vadd.f32 %v393_v35, %v322_v34 }
 0x2d1   : > { %v562_v37 = vpop.f32.mrf.mxu1 }
 0x2d2   : > { %399 = vst.msk [vmem:[#allocation4] sm:$0x1] %vm398_vm7, %v397_v36 }
 0x2d3   : > { %v406_v38 = vld [vmem:[#allocation3] sm:$0x1]  ;;  %v749_v39 = vmov 0  }
 0x2d4   : > { %647 = vset.pattern.permute.xlu0 %v749_v39 }
 0x2d5   : > { %409 = vperm.xlu0 %647, %v406_v38  }
 0x2d9   : > { %v405_v42 = vld [vmem:[#allocation4] sm:$0x1] }
 0x350   : > { %v410_v40 = vpop.permute.xlu0 %409 }
 0x351   : > { %v415_v41 = vrot.slane %v410_v40, %v299_v18 }
 0x353   : > { %648 = vrcp.f32 %v415_v41 }
 0x360   : > { %v649_v43 = vpop.eup %648 }
 0x361   : > { %v417_v44 = vmul.f32 %v649_v43, %v405_v42 }
 0x363   : > { %418 = vst.msk [vmem:[%s853_s18] sm:$0x1] %vm398_vm7, %v417_v44 }
 0x364 PF: > { %s528_s12 = sshll.u32 %s730_s13, 4  ;;  %s432_s30 = sshll.u32 %s853_s18, 4  ;;  %s433_s30 = int_to_ptr.vmem [resolvable:$true] %s432_s30 }
 0x365   : > { %s430_s29 = scalar_lea.hbm %s927_s2, %s528_s12  ;;  %s420_s3 = scalar_lea.sflag [#allocation6], %s168_s26 }
 0x366   : > { %s650_s4 = scalar_lea.vmem %s433_s30, 16  ;;  %s750_s5 = smov [#allocation5]  }
 0x367   : > { %p651_p2 = scmp.ne.s32.totalorder %s433_s30, %s650_s4  ;;  %s654_s6 = sshll.u32 %s750_s5, 4  ;;  %s655_s6 = int_to_ptr.vmem [resolvable:$false] %s654_s6 }
 0x368   : > { %s656_s7 = scalar_lea.vmem %s655_s6, 32  ;;  %p657_p6 = scmp.lt.s32.totalorder %s433_s30, %s655_s6 }
 0x369   : > { %p652_p4 = pnand %p651_p2, %p815_p3  ;;  %p658_p7 = scmp.lt.s32.totalorder %s656_s7, %s650_s4 }
 0x36b   : > { %p653_p5 = pneg %p652_p4  ;;  %p659_p8 = por %p658_p7, %p657_p6 }
 0x36d   : > { %p660_p10 = pnand %p659_p8, %p653_p5 }
 0x36f   : > { %663 = shalt.err (!%p660_p10)
}
 0x370   : > { %s664_s13 = scalar_lea.hbm %s430_s29, 16  ;;  %s668_s17 = scalar_lea.hbm %s927_s2, 32 }
 0x371   : > { %p665_p11 = scmp.ne.s32.totalorder %s430_s29, %s664_s13  ;;  %p669_p0 = scmp.lt.s32.totalorder %s430_s29, %s927_s2 }
 0x372   : > { %p670_p1 = scmp.lt.s32.totalorder %s668_s17, %s664_s13 }
 0x373   : > { %p666_p12 = pnand %p665_p11, %p815_p3 }
 0x374   : > { %p671_p2 = por %p670_p1, %p669_p0 }
 0x375   : > { %p667_p13 = pneg %p666_p12 }
 0x377   : > { %p672_p4 = pnand %p671_p2, %p667_p13 }
 0x379   : > { %675 = shalt.err (!%p672_p4)
}
 0x37a   : > { %564 = dma.vmem_to_hbm [thread:$0]  (%p815_p3), %s433_s30, 16, %s430_s29, %s420_s3  }
 0x37b PF: > { %p570_p5 = scmp.ge.s32.totalorder %s742_s16, 2  ;;  %s444_s24 = sand.u32 1, %s714_s9  }
 0x37c   : > { %s445_s12 = scalar_lea.sflag [#allocation6], %s444_s24 }
 0x37d   : > { %p567_p6 = pnand %p570_p5, %p825_p9 }
 0x37f   : > { %p568_p7 = pneg %p567_p6 }
 0x381   : > { %709 = dma.done.wait (%p568_p7), %s445_s12, 16  }
 0x382   : > { %711 = vsyncadd (%p568_p7), %s445_s12, 4294967280  ;;  %s15_s16 = sadd.s32 1, %s742_s16   ;;  %s930_s9 = smov %s718_s10 }
 0x383   : > { %p12_p8 = scmp.ge.s32.totalorder %s15_s16, 8   ;;  %s931_s10 = smov %s722_s11 }
 0x384   : > { %s932_s11 = smov %s833_s25  ;;  %s933_s12 = smov %s734_s14 }
 0x385   : > { %s934_s13 = smov %s738_s15  ;;  %s935_s14 = smov %s938_s19 }
 0x386   : > { %s936_s15 = smov %s942_s20  ;;  %14 = sbr.rel (!%p12_p8) target bundleno = 5 (0x5), region = 74 }
 0x38b   :  { %449 = vsyncpa [#allocation6], 1 }
 0x38c   :  { %451 = vsyncpa [#allocation6 + $0x1], 1 }

</bundles_post_ra>
